<compile_context>
chip_gen: v7x
topology: tpu7x:2x2x1
jax: 0.10.0
libtpu: 0.0.40
codegen_flags: <defaults>
</compile_context>

<pallas_src>
import functools

import jax
import jax.numpy as jnp
from jax.experimental import pallas as pl
from jax.experimental.pallas import tpu as pltpu


# ------------------------------- kernel body --------------------------------


def _simam_kernel(x_ref, o_ref, *, e_lambda, inv_n, axis, approx):
    """One (rows, F) or (F, rows) block; `axis` is the feature/reduction axis."""
    x = x_ref[...].astype(jnp.float32)
    f = x.shape[axis]
    inv_f = 1.0 / float(f)

    # Single-pass statistics: two independent reductions (XLU) instead of the
    # serial mean -> center -> square -> sum chain.
    s1 = jnp.sum(x, axis=axis, keepdims=True)
    s2 = jnp.sum(x * x, axis=axis, keepdims=True)
    mu = s1 * inv_f
    # sum((x - mu)^2) = sum(x^2) - (sum x)^2 / f ; clamp cancellation residue.
    sum_d2 = jnp.maximum(s2 - s1 * mu, 0.0)
    denom = 4.0 * (sum_d2 * inv_n + e_lambda)          # per-row scalar

    # Per-row reciprocal hoisted out of the elementwise divide (EUP work / F).
    if approx:
        inv_den = pl.reciprocal(denom, approx=True)    # EUP vrcp
    else:
        inv_den = 1.0 / denom                          # exact, still per-row

    d = x - mu
    y = d * d * inv_den + 0.5
    # sigmoid(y) = 0.5 * tanh(0.5 * y) + 0.5 : single EUP push per element.
    sig = 0.5 * jnp.tanh(0.5 * y) + 0.5
    o_ref[...] = (x * sig).astype(o_ref.dtype)


# --------------------------- hardware-aware tiling ---------------------------


def _hw_params():
    """(num_tensorcores, physical VMEM bytes per core, target block bytes)."""
    try:
        kind = jax.devices()[0].device_kind.lower()
    except Exception:  # defensive: never let the query break the wrapper
        kind = ""
    is_v7 = ("v7" in kind) or ("7x" in kind)
    num_cores = 2 if is_v7 else 1
    vmem_phys = (64 << 20) if is_v7 else (128 << 20)
    try:  # prefer the real number when the query is available
        info = pltpu.get_tpu_info()
        vmem_phys = int(getattr(info, "vmem_capacity_bytes", vmem_phys)) or vmem_phys
    except Exception:
        pass
    # v7x: fixed ~0.35 us/step vs 3.2 TB/s HBM -> want >= ~4 MiB blocks.
    # v5e/v6e: slower HBM, more physical VMEM -> ~6 MiB blocks.
    target_block = (4 << 20) if is_v7 else (6 << 20)
    return num_cores, vmem_phys, target_block


def _pick_tile(r, f, itemsize, *, align, target_bytes, num_cores, vmem_cap):
    """Largest row tile (multiple of `align` dividing r, or the full extent r)
    that fits the per-step VMEM budget and is near `target_bytes`. Keeps
    >= 2 grid steps per TensorCore only when there is more than one core."""
    per_row = 4 * f * itemsize + 4 * f * 4   # 2x dbl-buffered in+out, f32 temps
    budget_cap = max(per_row, int(vmem_cap * 0.6))

    cands = sorted({t for t in range(align, r, align) if r % t == 0} | {r})
    fitting = [t for t in cands if t * per_row <= budget_cap] or [cands[0]]

    max_rows_target = max(1, target_bytes // max(1, f * itemsize))
    under = [t for t in fitting if t <= max_rows_target]
    tile = max(under) if under else min(fitting)

    if num_cores > 1:                         # shrink only when it buys cores
        while (r // tile) < 2 * num_cores:
            smaller = [t for t in fitting if t < tile]
            if not smaller:
                break
            tile = max(smaller)
    return tile


# --------------------------------- wrapper -----------------------------------


def simam(x, e_lambda=1e-4, approx_reciprocal=True):
    """SimAM forward for x of shape (B, C, F). Returns same shape/dtype.

    The kernel upcasts to f32 internally, so bf16 inputs/outputs are fine and
    halve HBM traffic (this op is bandwidth-bound on every TPU generation).
    """
    b, c, f = x.shape
    if f < 2:
        raise ValueError("simam requires f >= 2 (n = f - 1 must be positive)")
    r = b * c
    itemsize = jnp.dtype(x.dtype).itemsize
    num_cores, vmem_phys, target_bytes = _hw_params()

    # Lane-dense layout choice: if F can't fill lanes but the row axis can,
    # put rows on lanes (transpose) and reduce over sublanes instead.
    transposed = (f < 128) and (r >= 128)

    x2 = x.reshape(r, f)
    if transposed:
        x2 = x2.T                                   # (F, R): rows on lanes
        align, axis = 128, 0
    else:
        align, axis = 8, 1

    tile = _pick_tile(r, f, itemsize, align=align, target_bytes=target_bytes,
                      num_cores=num_cores, vmem_cap=vmem_phys)
    if r % tile != 0:                               # belt-and-suspenders
        tile = r                                    # full extent is always legal
    grid = (r // tile,)

    if transposed:
        block = (f, tile)
        index_map = lambda i: (0, i)
    else:
        block = (tile, f)
        index_map = lambda i: (i, 0)

    per_row = 4 * f * itemsize + 4 * f * 4
    vmem_limit = int(min(vmem_phys * 9 // 10,
                         max(32 << 20, tile * per_row + (4 << 20))))

    kernel = functools.partial(
        _simam_kernel, e_lambda=float(e_lambda), inv_n=1.0 / float(f - 1),
        axis=axis, approx=approx_reciprocal)

    nbytes = x.size * itemsize
    out2 = pl.pallas_call(
        kernel,
        out_shape=jax.ShapeDtypeStruct(x2.shape, x.dtype),
        grid_spec=pltpu.PrefetchScalarGridSpec(
            num_scalar_prefetch=0,
            grid=grid,
            # F (reduction axis) is never tiled: statistics need the full row.
            in_specs=[pl.BlockSpec(block, index_map)],
            out_specs=pl.BlockSpec(block, index_map),
        ),
        compiler_params=pltpu.CompilerParams(
            dimension_semantics=("parallel",),
            vmem_limit_bytes=vmem_limit,
        ),
        cost_estimate=pl.CostEstimate(
            flops=10 * x.size,
            transcendentals=2 * x.size,
            bytes_accessed=2 * nbytes,
        ),
    )(x2)

    if transposed:
        out2 = out2.T
    return out2.reshape(b, c, f)


# -------------------------------- reference ----------------------------------


def _simam_ref(x, e_lambda=1e-4):
    """Pure-JAX reference mirroring the PyTorch forward."""
    x = x.astype(jnp.float32)
    f = x.shape[-1]
    n = f - 1
    d2 = (x - x.mean(axis=-1, keepdims=True)) ** 2
    y = d2 / (4.0 * (d2.sum(axis=-1, keepdims=True) / n + e_lambda)) + 0.5
    return x * jax.nn.sigmoid(y)


if __name__ == "__main__":
    key = jax.random.PRNGKey(0)
    k1, k2 = jax.random.split(key)

    # Case 1: tiny (b, c, f) consistent with the module's forward (F on lanes).
    b, c, f = 2, 4, 16
    x1 = jax.random.normal(k1, (b, c, f), dtype=jnp.float32)
    ref1 = _simam_ref(x1, e_lambda=1e-4)

    out1_exact = jax.block_until_ready(simam(x1, 1e-4, approx_reciprocal=False))
    assert out1_exact.shape == x1.shape and out1_exact.dtype == x1.dtype
    assert jnp.allclose(out1_exact, ref1, atol=2e-5, rtol=2e-5), "case1 exact mismatch"

    out1_fast = jax.block_until_ready(simam(x1, 1e-4, approx_reciprocal=True))
    assert jnp.allclose(out1_fast, ref1, atol=2e-2, rtol=2e-2), "case1 approx mismatch"

    # Case 2: R = B*C >= 128 with small F -> exercises the lane-dense
    # transposed layout (rows on lanes, reduction over sublanes).
    b2, c2, f2 = 8, 32, 16
    x2 = jax.random.normal(k2, (b2, c2, f2), dtype=jnp.float32)
    ref2 = _simam_ref(x2, e_lambda=1e-4)

    out2_exact = jax.block_until_ready(simam(x2, 1e-4, approx_reciprocal=False))
    assert out2_exact.shape == x2.shape and out2_exact.dtype == x2.dtype
    assert jnp.allclose(out2_exact, ref2, atol=2e-5, rtol=2e-5), "case2 exact mismatch"

    out2_fast = jax.block_until_ready(simam(x2, 1e-4, approx_reciprocal=True))
    assert jnp.allclose(out2_fast, ref2, atol=2e-2, rtol=2e-2), "case2 approx mismatch"

    print("KERNEL_OK")
</pallas_src>

<mosaic_0001>
module attributes {stable_mosaic.version = 11 : i64} {
  func.func @_simam_kernel(%arg0: i32, %arg1: memref<8x16xf32, #tpu.memory_space<vmem>>, %arg2: memref<8x16xf32, #tpu.memory_space<vmem>>) attributes {dimension_semantics = [#tpu.dimension_semantics<parallel>], iteration_bounds = array<i64: 1>, scalar_prefetch = 0 : i64, scratch_operands = 0 : i64, tpu.core_type = #tpu.core_type<tc>, window_params = [{transform_indices = @transform_0, window_bounds = array<i64: 8, 16>}, {transform_indices = @transform_1, window_bounds = array<i64: 8, 16>}]} {
    %c0 = arith.constant 0 : index
    %c0_0 = arith.constant 0 : index
    %0 = vector.load %arg1[%c0, %c0_0] : memref<8x16xf32, #tpu.memory_space<vmem>>, vector<8x16xf32>
    %cst = arith.constant dense<0.000000e+00> : vector<8xf32>
    %1 = vector.multi_reduction <add>, %0, %cst [1] : vector<8x16xf32> to vector<8xf32>
    %2 = vector.shape_cast %1 : vector<8xf32> to vector<8x1xf32>
    %3 = arith.mulf %0, %0 : vector<8x16xf32>
    %cst_1 = arith.constant dense<0.000000e+00> : vector<8xf32>
    %4 = vector.multi_reduction <add>, %3, %cst_1 [1] : vector<8x16xf32> to vector<8xf32>
    %5 = vector.shape_cast %4 : vector<8xf32> to vector<8x1xf32>
    %cst_2 = arith.constant 6.250000e-02 : f32
    %6 = vector.broadcast %cst_2 : f32 to vector<8x1xf32>
    %7 = arith.mulf %2, %6 : vector<8x1xf32>
    %8 = arith.mulf %2, %7 : vector<8x1xf32>
    %9 = arith.subf %5, %8 : vector<8x1xf32>
    %cst_3 = arith.constant 0.000000e+00 : f32
    %10 = vector.broadcast %cst_3 : f32 to vector<8x1xf32>
    %11 = arith.maximumf %9, %10 : vector<8x1xf32>
    %cst_4 = arith.constant 0.0666666701 : f32
    %12 = vector.broadcast %cst_4 : f32 to vector<8x1xf32>
    %13 = arith.mulf %11, %12 : vector<8x1xf32>
    %cst_5 = arith.constant 9.99999974E-5 : f32
    %14 = vector.broadcast %cst_5 : f32 to vector<8x1xf32>
    %15 = arith.addf %13, %14 : vector<8x1xf32>
    %cst_6 = arith.constant 4.000000e+00 : f32
    %16 = vector.broadcast %cst_6 : f32 to vector<8x1xf32>
    %17 = arith.mulf %16, %15 : vector<8x1xf32>
    %cst_7 = arith.constant 1.000000e+00 : f32
    %18 = vector.broadcast %cst_7 : f32 to vector<8x1xf32>
    %19 = arith.divf %18, %17 : vector<8x1xf32>
    %20 = vector.broadcast %7 : vector<8x1xf32> to vector<8x16xf32>
    %21 = arith.subf %0, %20 : vector<8x16xf32>
    %22 = arith.mulf %21, %21 : vector<8x16xf32>
    %23 = vector.broadcast %19 : vector<8x1xf32> to vector<8x16xf32>
    %24 = arith.mulf %22, %23 : vector<8x16xf32>
    %cst_8 = arith.constant 5.000000e-01 : f32
    %25 = vector.broadcast %cst_8 : f32 to vector<8x16xf32>
    %26 = arith.addf %24, %25 : vector<8x16xf32>
    %cst_9 = arith.constant 5.000000e-01 : f32
    %27 = vector.broadcast %cst_9 : f32 to vector<8x16xf32>
    %28 = arith.mulf %27, %26 : vector<8x16xf32>
    %29 = math.tanh %28 : vector<8x16xf32>
    %cst_10 = arith.constant 5.000000e-01 : f32
    %30 = vector.broadcast %cst_10 : f32 to vector<8x16xf32>
    %31 = arith.mulf %30, %29 : vector<8x16xf32>
    %cst_11 = arith.constant 5.000000e-01 : f32
    %32 = vector.broadcast %cst_11 : f32 to vector<8x16xf32>
    %33 = arith.addf %31, %32 : vector<8x16xf32>
    %34 = arith.mulf %0, %33 : vector<8x16xf32>
    %c0_12 = arith.constant 0 : index
    %c0_13 = arith.constant 0 : index
    %35 = vector.load %arg2[%c0_12, %c0_13] : memref<8x16xf32, #tpu.memory_space<vmem>>, vector<8x16xf32>
    tpu.vector_store %arg2[%c0_12, %c0_13], %34 {strides = array<i32>} : memref<8x16xf32, #tpu.memory_space<vmem>>, vector<8x16xf32>,
    return
  }
  func.func @transform_0(%arg0: i32) -> (i32, i32) {
    %c0_i32 = arith.constant 0 : i32
    %c0_i32_0 = arith.constant 0 : i32
    return %arg0, %c0_i32 : i32, i32
  }
  func.func @transform_1(%arg0: i32) -> (i32, i32) {
    %c0_i32 = arith.constant 0 : i32
    %c0_i32_0 = arith.constant 0 : i32
    return %arg0, %c0_i32 : i32, i32
  }
}

</mosaic_0001>

<bundles_post_ra>
// kernel: tpu_custom_call.1
= control target key start
LH: loop header
LB: loop body
LE: loop exit
PB: predicated region body
PF: predicated region fallthrough
CT: control target
= control target key end

     0   :  { %6 = vsyncpa [#allocation3], 0  ;;  %s157_s0 = inlined_call_operand.hbm [shape: f32[8,16], index: 0, kind: input, shape index: {}]   ;;  %s158_s1 = inlined_call_operand.hbm [shape: f32[8,16], index: 1, kind: output, shape index: {}]  }
   0x1   :  { %7 = vsyncpa [#allocation4], 0  ;;  %s118_s6 = smov [#allocation2]   ;;  %s70_s10 = scalar_lea.hbm %s157_s0, 128 }
   0x2   :  { %s14_s7 = sshll.u32 %s118_s6, 4  ;;  %p71_p0 = scmp.ne.s32.totalorder %s157_s0, %s70_s10  ;;  %s15_s7 = int_to_ptr.vmem [resolvable:$true] %s14_s7 }
   0x3   :  { %p74_p1 = scmp.lt.u32.totalorder %s70_s10, %s157_s0 }
   0x5   :  { %p76_p2 = pnand %p74_p1, %p71_p0 }
   0x7   :  { %79 = shalt.err (!%p76_p2)
}
   0x8   :  { %s80_s15 = scalar_lea.vmem %s15_s7, 128  ;;  %p85_p4 = scmp.lt.s32.totalorder %s15_s7, %s15_s7 }
   0x9   :  { %p81_p3 = scmp.ne.s32.totalorder %s15_s7, %s80_s15  ;;  %p86_p5 = scmp.lt.s32.totalorder %s80_s15, %s80_s15 }
   0xb   :  { %p87_p6 = por %p86_p5, %p85_p4 }
   0xd   :  { %p88_p7 = pnand %p87_p6, %p81_p3 }
   0xf   :  { %91 = shalt.err (!%p88_p7)
}
  0x10   :  { %17 = dma.hbm_to_vmem [thread:$0]  %s157_s0, 128, %s15_s7, [#allocation3]  }
  0x11   :  { %114 = dma.done.wait [#allocation3], 128  }
  0x12   :  { %115 = vsyncadd [#allocation3], 4294967168  ;;  %vm22_vm0 = vcmask 130048   ;;  %v21_v0 = vld [vmem:[#allocation2] sm:$0xff]  ;;  %s119_s0 = smov [#allocation5]  }
  0x13   :  { %v23_v1 = vsel %vm22_vm0, %v21_v0, 0.0  ;;  %v26_v2 = vmul.f32 %v21_v0, %v21_v0  ;;  %s55_s18 = sshll.u32 %s119_s0, 4  ;;  %s56_s18 = int_to_ptr.vmem [resolvable:$true] %s55_s18 }
  0x14   :  { %24 = vadd.xlane.f32.xlu0 %v23_v1  ;;  %s92_s19 = scalar_lea.vmem %s56_s18, 128  ;;  %p97_p9 = scmp.lt.s32.totalorder %s56_s18, %s56_s18 }
  0x15   :  { %v27_v3 = vsel %vm22_vm0, %v26_v2, 0.0  ;;  %p93_p8 = scmp.ne.s32.totalorder %s56_s18, %s92_s19  ;;  %p98_p10 = scmp.lt.s32.totalorder %s92_s19, %s92_s19 }
  0x17   :  { %p99_p11 = por %p98_p10, %p97_p9 }
  0x18   :  { %28 = vadd.xlane.f32.xlu0 %v27_v3 }
  0x19   :  { %p100_p12 = pnand %p99_p11, %p93_p8 }
  0xa1   :  { %v25_v4 = vpop.xlane.xlu0 %24 }
  0xa2   :  { %v30_v5 = vmul.f32 0.0625, %v25_v4 }
  0xa4   :  { %v31_v6 = vmul.f32 %v30_v5, %v25_v4  ;;  %v39_v13 = vsub.f32 %v21_v0, %v30_v5 }
  0xa5   :  { %v29_v7 = vpop.xlane.xlu0 %28 }
  0xa6   :  { %v32_v8 = vsub.f32 %v29_v7, %v31_v6  ;;  %v40_v14 = vmul.f32 %v39_v13, %v39_v13 }
  0xa8   :  { %v33_v9 = vmax.f32 %v32_v8, 0.0 }
  0xaa   :  { %v34_v10 = vmul.f32 0.06666667, %v33_v9 }
  0xac   :  { %v35_v11 = vadd.f32 0.0001, %v34_v10 }
  0xae   :  { %v36_v12 = vmul.f32 4.0, %v35_v11 }
  0xb0   :  { %66 = vrcp.f32 %v36_v12 }
  0xba   :  { %v67_v15 = vpop.eup %66 }
  0xbb   :  { %v41_v16 = vmul.f32 %v67_v15, %v40_v14 }
  0xbd   :  { %v42_v17 = vadd.f32 0.5, %v41_v16 }
  0xbf   :  { %v43_v18 = vmul.f32 0.5, %v42_v17 }
  0xc1   :  { %68 = vtanh.f32 %v43_v18 }
  0xcb   :  { %v69_v19 = vpop.eup %68 }
  0xcc   :  { %v45_v20 = vmul.f32 0.5, %v69_v19 }
  0xce   :  { %v46_v21 = vadd.f32 0.5, %v45_v20 }
  0xd0   :  { %v47_v22 = vmul.f32 %v46_v21, %v21_v0 }
  0xd2   :  { %48 = vst.msk [vmem:[#allocation5] sm:$0xff] %vm22_vm0, %v47_v22 }
  0xd3   :  { %103 = shalt.err (!%p100_p12)
}
  0xd4   :  { %s104_s22 = scalar_lea.hbm %s158_s1, 128 }
  0xd5   :  { %p105_p13 = scmp.ne.s32.totalorder %s158_s1, %s104_s22  ;;  %p108_p0 = scmp.lt.u32.totalorder %s104_s22, %s158_s1 }
  0xd7   :  { %p110_p1 = pnand %p108_p0, %p105_p13 }
  0xd9   :  { %113 = shalt.err (!%p110_p1)
}
  0xda   :  { %58 = dma.vmem_to_hbm [thread:$0]  %s56_s18, 128, %s158_s1, [#allocation4]  }
  0xdb   :  { %116 = dma.done.wait [#allocation4], 128  }
  0xdc   :  { %117 = vsyncadd [#allocation4], 4294967168 }
  0xdd   :  { %62 = vsyncpa [#allocation3], 1 }
  0xde   :  { %63 = vsyncpa [#allocation4], 1 }

</bundles_post_ra>
